<compile_context>
chip_gen: v5e
topology: v5e:2x2
jax: 0.10.0
libtpu: 0.0.40
codegen_flags: <defaults>
</compile_context>

<pallas_src>
import jax
import jax.numpy as jnp
from jax.experimental import pallas as pl
from jax.experimental.pallas import tpu as pltpu


def _hardswish_kernel(x_ref, o_ref):
    x = x_ref[...]
    # h_sigmoid(x) = relu6(x + 3) / 6 ; hardswish(x) = x * h_sigmoid(x)
    hs = jnp.clip(x + 3.0, 0.0, 6.0) * (1.0 / 6.0)
    o_ref[...] = (x * hs).astype(o_ref.dtype)


_LANES = 512  # lane-dense last dim (multiple of 128)


def _chip_tuning():
    """Return (target block bytes per operand, vmem_limit_bytes, #TensorCores)."""
    try:
        kind = jax.devices()[0].device_kind.lower()
    except Exception:
        kind = ""
    if ("v5 lite" in kind) or ("v5e" in kind) or ("v5lite" in kind):
        # v5e: 0.82 TB/s HBM, 16 MiB scoped-VMEM default -> 2 MiB blocks
        # (2 operands x 2 buffers x 2 MiB = 8 MiB) already amortize step cost.
        return 2 * 1024 * 1024, None, 1
    if "v6" in kind:
        # v6e: 1.4 TB/s HBM, 32 MiB scoped default -> 4 MiB blocks (16 MiB
        # pipeline footprint) without touching the VMEM limit.
        return 4 * 1024 * 1024, None, 1
    if ("v7" in kind) or ("7x" in kind):
        # v7x: 3.2 TB/s HBM per TC, 64 MiB physical VMEM, 2 TCs per chip.
        # 6 MiB blocks -> 24 MiB pipeline; raise the scoped limit explicitly.
        return 6 * 1024 * 1024, 40 * 1024 * 1024, 2
    # Unknown / older chips: conservative defaults.
    return 2 * 1024 * 1024, None, 1


def hardswish(x: jax.Array) -> jax.Array:
    """Elementwise HardSwish on an arbitrarily-shaped array (NCHW or anything)."""
    orig_shape = x.shape
    orig_dtype = x.dtype
    n = x.size
    if n == 0:
        return x

    itemsize = jnp.dtype(orig_dtype).itemsize
    # Sublane granularity: 8 rows for 32-bit, 16 for 16-bit (bf16 packs [16,128]).
    sub = 8 if itemsize >= 4 else (16 if itemsize == 2 else 32)

    target_block_bytes, vmem_limit, num_tc = _chip_tuning()

    # ---- lane-dense re-layout: flatten and view as (rows, _LANES) ----------
    flat = x.reshape(-1)
    rem = n % _LANES
    if rem:
        # Rare fallback (non-512-divisible size): minimal zero pad (<512 elems).
        # Exact because hardswish(0) == 0.
        flat = jnp.pad(flat, (0, _LANES - rem))
    rows = flat.size // _LANES
    x2d = flat.reshape(rows, _LANES)

    # ---- row-tile choice ----------------------------------------------------
    bytes_per_row = _LANES * itemsize
    tr_target = max(sub, (target_block_bytes // bytes_per_row) // sub * sub)

    if rows <= sub:
        # Tiny input: single block equal to the full array (allowed even if the
        # sublane dim is not a multiple of 8 because it equals the array dim).
        tr = rows
    else:
        # Multiple-of-sub tile, never larger than the data.
        tr = min(tr_target, (rows // sub) * sub)
        tr = max(tr, sub)
        if num_tc > 1:
            # Guarantee at least `num_tc` grid steps so both v7x TensorCores
            # stream; round the per-core share down to sublane granularity.
            per_core = max(sub, (pl.cdiv(rows, num_tc) // sub) * sub)
            tr = min(tr, per_core)

    grid = (pl.cdiv(rows, tr),)  # ragged last block handled by Pallas masking

    out2d = pl.pallas_call(
        _hardswish_kernel,
        out_shape=jax.ShapeDtypeStruct((rows, _LANES), orig_dtype),
        grid_spec=pltpu.PrefetchScalarGridSpec(
            num_scalar_prefetch=0,
            grid=grid,
            in_specs=[pl.BlockSpec((tr, _LANES), lambda i: (i, 0))],
            out_specs=pl.BlockSpec((tr, _LANES), lambda i: (i, 0)),
        ),
        compiler_params=pltpu.CompilerParams(
            dimension_semantics=("parallel",),
            vmem_limit_bytes=vmem_limit,
        ),
    )(x2d)

    out_flat = out2d.reshape(-1)
    if rem:
        out_flat = out_flat[:n]
    return out_flat.reshape(orig_shape)


def hardswish_ref(x: jax.Array) -> jax.Array:
    return x * (jnp.clip(x + 3.0, 0.0, 6.0) / 6.0)


if __name__ == "__main__":
    key = jax.random.PRNGKey(0)
    # NCHW, small shape consistent with a conv-net activation
    x = jax.random.normal(key, (2, 4, 16, 16), dtype=jnp.float32) * 4.0

    out = hardswish(x)
    out = jax.block_until_ready(out)

    ref = hardswish_ref(x)
    assert out.shape == x.shape and out.dtype == x.dtype
    assert jnp.allclose(out, ref, atol=1e-6, rtol=1e-6)

    print("KERNEL_OK")
</pallas_src>

<mosaic_0001>
module attributes {stable_mosaic.version = 11 : i64} {
  func.func @_hardswish_kernel(%arg0: i32, %arg1: memref<4x512xf32, #tpu.memory_space<vmem>>, %arg2: memref<4x512xf32, #tpu.memory_space<vmem>>) attributes {dimension_semantics = [#tpu.dimension_semantics<parallel>], iteration_bounds = array<i64: 1>, scalar_prefetch = 0 : i64, scratch_operands = 0 : i64, tpu.core_type = #tpu.core_type<tc>, window_params = [{transform_indices = @transform_0, window_bounds = array<i64: 4, 512>}, {transform_indices = @transform_1, window_bounds = array<i64: 4, 512>}]} {
    %c0 = arith.constant 0 : index
    %c0_0 = arith.constant 0 : index
    %0 = vector.load %arg1[%c0, %c0_0] : memref<4x512xf32, #tpu.memory_space<vmem>>, vector<4x512xf32>
    %cst = arith.constant 3.000000e+00 : f32
    %1 = vector.broadcast %cst : f32 to vector<4x512xf32>
    %2 = arith.addf %0, %1 : vector<4x512xf32>
    %cst_1 = arith.constant 0.000000e+00 : f32
    %cst_2 = arith.constant 6.000000e+00 : f32
    %3 = vector.broadcast %cst_1 : f32 to vector<4x512xf32>
    %4 = arith.maximumf %3, %2 : vector<4x512xf32>
    %5 = vector.broadcast %cst_2 : f32 to vector<4x512xf32>
    %6 = arith.minimumf %5, %4 : vector<4x512xf32>
    %cst_3 = arith.constant 0.166666672 : f32
    %7 = vector.broadcast %cst_3 : f32 to vector<4x512xf32>
    %8 = arith.mulf %6, %7 : vector<4x512xf32>
    %9 = arith.mulf %0, %8 : vector<4x512xf32>
    %c0_4 = arith.constant 0 : index
    %c0_5 = arith.constant 0 : index
    %10 = vector.load %arg2[%c0_4, %c0_5] : memref<4x512xf32, #tpu.memory_space<vmem>>, vector<4x512xf32>
    tpu.vector_store %arg2[%c0_4, %c0_5], %9 {strides = array<i32>} : memref<4x512xf32, #tpu.memory_space<vmem>>, vector<4x512xf32>,
    return
  }
  func.func @transform_0(%arg0: i32) -> (i32, i32) {
    %c0_i32 = arith.constant 0 : i32
    %c0_i32_0 = arith.constant 0 : i32
    return %arg0, %c0_i32 : i32, i32
  }
  func.func @transform_1(%arg0: i32) -> (i32, i32) {
    %c0_i32 = arith.constant 0 : i32
    %c0_i32_0 = arith.constant 0 : i32
    return %arg0, %c0_i32 : i32, i32
  }
}

</mosaic_0001>

<bundles_post_ra>
// kernel: tpu_custom_call.1
= control target key start
LH: loop header
LB: loop body
LE: loop exit
PB: predicated region body
PF: predicated region fallthrough
CT: control target
= control target key end

     0   :  { %6 = vsyncpa [#allocation3], 0  ;;  %s126_s0 = inlined_call_operand.hbm [shape: f32[4,512], index: 0, kind: input, shape index: {}]   ;;  %s127_s1 = inlined_call_operand.hbm [shape: f32[4,512], index: 1, kind: output, shape index: {}]  }
   0x1   :  { %7 = vsyncpa [#allocation4], 0  ;;  %s13_s8 = sshll.u32 %s126_s0, 4  ;;  %s108_s9 = smov [#allocation2]   ;;  %s14_s8 = int_to_ptr.hbm [resolvable:$true] %s13_s8 }
   0x2   :  { %s15_s10 = sshll.u32 %s108_s9, 4  ;;  %s16_s10 = int_to_ptr.vmem [resolvable:$true] %s15_s10 }
   0x3   :  { %18 = dma.hbm_to_vmem [thread:$0]  %s14_s8, 256, %s16_s10, [#allocation3]  }
   0x4   :  { %104 = dma.done.wait [#allocation3], 256  }
   0x5   :  { %105 = vsyncadd [#allocation3], 4294967040  ;;  %v23_v0 = vld [vmem:[#allocation2] sm:$0xff]  ;;  %v24_v1 = vld [vmem:[#allocation2 + $0x8] sm:$0xff]  ;;  %s109_s11 = smov [#allocation5]   ;;  %s44_s14 = sshll.u32 %s127_s1, 4  ;;  %s45_s14 = int_to_ptr.hbm [resolvable:$true] %s44_s14 }
   0x6   :  { %v25_v2 = vadd.f32 3.0, %v23_v0  ;;  %v26_v3 = vadd.f32 3.0, %v24_v1  ;;  %s42_s12 = sshll.u32 %s109_s11, 4  ;;  %s43_s12 = int_to_ptr.vmem [resolvable:$true] %s42_s12 }
   0x8   :  { %v27_v4 = vmax.f32 %v25_v2, 0.0  ;;  %v28_v5 = vmax.f32 %v26_v3, 0.0 }
   0xa   :  { %v29_v6 = vmin.f32 %v27_v4, 6.0  ;;  %v30_v7 = vmin.f32 %v28_v5, 6.0 }
   0xc   :  { %v31_v8 = vmul.f32 0.16666667, %v29_v6  ;;  %v32_v9 = vmul.f32 0.16666667, %v30_v7 }
   0xe   :  { %v33_v10 = vmul.f32 %v31_v8, %v23_v0  ;;  %v34_v11 = vmul.f32 %v32_v9, %v24_v1 }
  0x10   :  { %35 = vst [vmem:[#allocation5] sm:$0xff] %v33_v10 }
  0x11   :  { %36 = vst [vmem:[#allocation5 + $0x8] sm:$0xff] %v34_v11 }
  0x12   :  { %47 = dma.vmem_to_hbm [thread:$0]  %s43_s12, 256, %s45_s14, [#allocation4]  }
  0x13   :  { %106 = dma.done.wait [#allocation4], 256  }
  0x14   :  { %107 = vsyncadd [#allocation4], 4294967040 }
  0x15   :  { %52 = vsyncpa [#allocation3], 1 }
  0x16   :  { %53 = vsyncpa [#allocation4], 1 }

</bundles_post_ra>
